<compile_context>
chip_gen: v7x
topology: tpu7x:2x2x1
jax: 0.10.0
libtpu: 0.0.40
codegen_flags: <defaults>
</compile_context>

<pallas_src>
import jax
import jax.numpy as jnp
from jax.experimental import pallas as pl
from jax.experimental.pallas import tpu as pltpu


def _vmem_limit_bytes():
    """Generation-aware scoped-VMEM budget (v5e/v6e: 128 MiB, v7x: 64 MiB)."""
    cap = 128 * 1024 * 1024
    try:
        cap_attr = getattr(pltpu.get_tpu_info(), "vmem_capacity_bytes", None)
        if cap_attr:
            cap = int(cap_attr)
    except Exception:
        pass
    # Leave ~25% headroom for compiler scratch; clamp to sane bounds.
    return max(32 * 1024 * 1024, min(3 * cap // 4, 100 * 1024 * 1024))


VMEM_LIMIT = _vmem_limit_bytes()


def _pick_tile(dim, candidates, prefer_split=False):
    """Largest candidate dividing `dim`; optionally prefer >= 2 tiles (v7x TCs)."""
    if prefer_split:
        for t in candidates:
            if t <= dim and dim % t == 0 and dim // t >= 2:
                return t
    for t in candidates:
        if t <= dim and dim % t == 0:
            return t
    return dim


# ----------------------------- EHRNetwork kernel -----------------------------
def ehr_kernel(ehr_ref, mask_ref, wf_ref, b_ref, out_ref, acc_ref):
    k = pl.program_id(1)

    @pl.when(k == 0)
    def _():
        acc_ref[...] = jnp.zeros_like(acc_ref)

    # Masked visit-sum (bf16 VPU multiply + sublane reduce; mask is (tb, V, 1)
    # so the broadcast is along lanes), then ONE accumulated GEMM against the
    # pre-fused (vocab, mem_dim) weight tile.
    summed = jnp.sum(ehr_ref[...] * mask_ref[...], axis=1)              # (tb, tk) bf16
    acc_ref[...] += jnp.dot(summed, wf_ref[...],
                            preferred_element_type=jnp.float32)         # (tb, mem_dim)

    @pl.when(k == pl.num_programs(1) - 1)
    def _():
        out_ref[...] = jnp.maximum(acc_ref[...] + b_ref[...], 0.0)


def ehr_network(ehr, mask, w_emb, w_mlp, b_mlp):
    bs2, V, vocab = ehr.shape
    word_dim, mem_dim = w_mlp.shape
    # No nonlinearity between the embedding GEMM and the MLP GEMM -> fold them.
    w_fused = jnp.dot(w_emb, w_mlp, precision=jax.lax.Precision.HIGHEST)
    tb = _pick_tile(bs2, (256, 128, 64, 32, 16, 8), prefer_split=True)
    # Vocab (reduction) tile sized against the per-generation VMEM budget; the
    # double-buffered bf16 ehr tile dominates the footprint.
    tk = vocab
    for cand in (2048, 1024, 512, 256, 128):
        if cand <= vocab and vocab % cand == 0 and tb * V * cand * 2 * 2 <= VMEM_LIMIT // 3:
            tk = cand
            break
    grid = (bs2 // tb, vocab // tk)
    return pl.pallas_call(
        ehr_kernel,
        out_shape=jax.ShapeDtypeStruct((bs2, mem_dim), jnp.float32),
        grid=grid,
        in_specs=[
            pl.BlockSpec((tb, V, tk), lambda i, k: (i, 0, k)),
            pl.BlockSpec((tb, V, 1), lambda i, k: (i, 0, 0)),
            pl.BlockSpec((tk, mem_dim), lambda i, k: (k, 0)),
            pl.BlockSpec((1, mem_dim), lambda i, k: (0, 0)),
        ],
        out_specs=pl.BlockSpec((tb, mem_dim), lambda i, k: (i, 0)),
        scratch_shapes=[pltpu.VMEM((tb, mem_dim), jnp.float32)],
        compiler_params=pltpu.CompilerParams(
            dimension_semantics=("parallel", "arbitrary"),
            vmem_limit_bytes=VMEM_LIMIT),
    )(ehr.astype(jnp.bfloat16),
      mask.reshape(bs2, V, 1).astype(jnp.bfloat16),
      w_fused.astype(jnp.bfloat16),
      b_mlp)


# ----------------------------- ECEmbedding kernel -----------------------------
def ec_kernel(ec_ref, mask_ref, w_ref, b_ref, o1_ref, o2_ref, h_acc):
    l = pl.program_id(1)

    @pl.when(l == 0)
    def _():
        h_acc[...] = jnp.zeros_like(h_acc)

    ec = ec_ref[...]                                                    # (tl, word_dim) bf16
    # o1 path: masked token sum per trial (bf16 VPU multiply, exact since the
    # mask is 0/1, then f32 sublane reduce into the accumulator).
    h_acc[...] += jnp.sum((ec * mask_ref[...]).astype(jnp.float32),
                          axis=0, keepdims=True)                        # (1, word_dim)
    # o2 = relu(mlp(input.view(-1, dim))): one flat bf16 GEMM with f32 accumulate.
    o2 = jnp.dot(ec, w_ref[...], preferred_element_type=jnp.float32) + b_ref[...]
    o2_ref[...] = jnp.maximum(o2, 0.0)

    @pl.when(l == pl.num_programs(1) - 1)
    def _():
        o1 = jnp.dot(h_acc[...].astype(jnp.bfloat16), w_ref[...],
                     preferred_element_type=jnp.float32) + b_ref[...]
        o1_ref[...] = jnp.maximum(o1, 0.0)


def ec_embedding(ec, mask, w, b):
    """ECEmbedding.forward: returns (o1, o2) exactly like the torch module."""
    B, L, word_dim = ec.shape
    cd4 = w.shape[1]
    tl = _pick_tile(L, (512, 256, 128, 64, 32, 16, 8))
    grid = (B, L // tl)
    o1, o2 = pl.pallas_call(
        ec_kernel,
        out_shape=(jax.ShapeDtypeStruct((B, 1, cd4), jnp.float32),
                   jax.ShapeDtypeStruct((B, L, cd4), jnp.float32)),
        grid=grid,
        in_specs=[
            pl.BlockSpec((None, tl, word_dim), lambda bb, ll: (bb, ll, 0)),
            pl.BlockSpec((None, tl, 1), lambda bb, ll: (bb, ll, 0)),
            pl.BlockSpec((word_dim, cd4), lambda bb, ll: (0, 0)),
            pl.BlockSpec((1, cd4), lambda bb, ll: (0, 0)),
        ],
        out_specs=[pl.BlockSpec((None, 1, cd4), lambda bb, ll: (bb, 0, 0)),
                   pl.BlockSpec((None, tl, cd4), lambda bb, ll: (bb, ll, 0))],
        scratch_shapes=[pltpu.VMEM((1, word_dim), jnp.float32)],
        compiler_params=pltpu.CompilerParams(
            dimension_semantics=("parallel", "arbitrary"),
            vmem_limit_bytes=VMEM_LIMIT),
    )(ec.astype(jnp.bfloat16),
      mask.reshape(B, L, 1).astype(jnp.bfloat16),
      w.astype(jnp.bfloat16),
      b)
    return o1.reshape(B, cd4), o2


# ----------------------------- Alignment kernel -----------------------------
def alignment_kernel(crit_ref, mem_ref, waq_ref, wam_ref, ba_ref,
                     wmq_ref, wmm_ref, bm_ref, out_ref):
    crit = crit_ref[...]                                    # (num_ec, Q) bf16 (bs1 squeezed)
    mem = mem_ref[...]                                      # (tb2, M)   bf16
    num_ec = crit.shape[0]

    # attention logits of cat([criteria, ehr]) @ Wa via split weights; the N=1
    # GEMMs are VPU multiply + lane (XLU) reduction (keeps the MXU free).
    c_logit = jnp.sum(crit.astype(jnp.float32) * waq_ref[...], axis=-1, keepdims=True)
    m_logit = jnp.sum(mem.astype(jnp.float32) * wam_ref[...], axis=-1, keepdims=True)
    logits = m_logit + jnp.reshape(c_logit, (1, num_ec)) + ba_ref[...]       # (tb2, num_ec)

    # softmax over num_ec (dim=2 in the torch code); approx reciprocal -> EUP slot.
    logits = logits - jnp.max(logits, axis=-1, keepdims=True)
    e = jnp.exp(logits)
    attn = e * pl.reciprocal(jnp.sum(e, axis=-1, keepdims=True), approx=True)

    # mlp(attn * cat([criteria, ehr])) == attn * (crit @ WmQ + mem @ WmM) + b_m,
    # emitted directly in the lane-dense merged (tb2, num_ec*mlp_dim) layout.
    c_proj = jnp.dot(crit, wmq_ref[...], preferred_element_type=jnp.float32)  # (num_ec, mlp)
    m_proj = jnp.dot(mem, wmm_ref[...], preferred_element_type=jnp.float32)   # (tb2, mlp)
    cols = []
    for e_idx in range(num_ec):
        feat = m_proj + c_proj[e_idx:e_idx + 1, :]                            # (tb2, mlp)
        cols.append(attn[:, e_idx:e_idx + 1] * feat + bm_ref[...])
    out_ref[...] = jnp.concatenate(cols, axis=-1)                             # (tb2, num_ec*mlp)


def alignment(memory, criteria, params):
    bs1, num_ec, Q = criteria.shape
    bs2, M = memory.shape
    mlp_dim = params['wm_q'].shape[1]
    tb2 = _pick_tile(bs2, (512, 256, 128, 64, 32, 16, 8), prefer_split=True)
    waq_row = params['wa_q'].T          # (1, Q) row layout for the VPU reduction
    wam_row = params['wa_m'].T          # (1, M)
    out = pl.pallas_call(
        alignment_kernel,
        out_shape=jax.ShapeDtypeStruct((bs1, bs2, num_ec * mlp_dim), jnp.float32),
        grid=(bs1, bs2 // tb2),
        in_specs=[
            pl.BlockSpec((None, num_ec, Q), lambda i, j: (i, 0, 0)),   # bs1 squeezed
            pl.BlockSpec((tb2, M), lambda i, j: (j, 0)),
            pl.BlockSpec((1, Q), lambda i, j: (0, 0)),
            pl.BlockSpec((1, M), lambda i, j: (0, 0)),
            pl.BlockSpec((1, 1), lambda i, j: (0, 0)),
            pl.BlockSpec((Q, mlp_dim), lambda i, j: (0, 0)),
            pl.BlockSpec((M, mlp_dim), lambda i, j: (0, 0)),
            pl.BlockSpec((1, mlp_dim), lambda i, j: (0, 0)),
        ],
        out_specs=pl.BlockSpec((None, tb2, num_ec * mlp_dim), lambda i, j: (i, j, 0)),
        compiler_params=pltpu.CompilerParams(
            dimension_semantics=("parallel", "parallel"),
            vmem_limit_bytes=VMEM_LIMIT),
    )(criteria.astype(jnp.bfloat16), memory.astype(jnp.bfloat16),
      waq_row, wam_row, params['b_a'],
      params['wm_q'].astype(jnp.bfloat16), params['wm_m'].astype(jnp.bfloat16),
      params['b_m'])
    return out.reshape(bs1, bs2, num_ec, mlp_dim)


# ----------------------------- BuildModel forward -----------------------------
def build_model_forward(inputs, params):
    memory = ehr_network(inputs['v'], inputs['mask'],
                         params['w_emb'], params['w_ehr_mlp'], params['b_ehr_mlp'])
    _inc_emb, inc_ec_emb = ec_embedding(inputs['inc_emb'], inputs['inc_emb_mask'],
                                        params['w_ec'], params['b_ec'])
    _exc_emb, exc_ec_emb = ec_embedding(inputs['exc_emb'], inputs['exc_emb_mask'],
                                        params['w_ec'], params['b_ec'])
    logit_inc = alignment(memory, inc_ec_emb, params)
    logit_exc = alignment(memory, exc_ec_emb, params)
    # Alignment returns (h, None, None) -> response_* / query_* are None.
    return {'logit_inc': logit_inc, 'logit_exc': logit_exc,
            'response_inc': None, 'response_exc': None,
            'query_inc': None, 'query_exc': None}


# ----------------------------- pure-JAX references -----------------------------
def reference_ec(ec, mask, w, b):
    h = jnp.sum(ec * mask[..., None], axis=1)
    o1 = jax.nn.relu(h @ w + b)
    o2 = jax.nn.relu(jnp.einsum('bld,dc->blc', ec, w) + b)
    return o1, o2


def reference_logits(ehr, ehr_mask, ec, params):
    h = jnp.einsum('bvc,cw->bvw', ehr, params['w_emb'])
    h = jnp.sum(h * ehr_mask[..., None], axis=1)
    memory = jax.nn.relu(h @ params['w_ehr_mlp'] + params['b_ehr_mlp'])
    ec_emb = jax.nn.relu(jnp.einsum('bld,dc->blc', ec, params['w_ec']) + params['b_ec'])
    bs1, num_ec, Q = ec_emb.shape
    bs2, M = memory.shape
    crit = jnp.broadcast_to(ec_emb[:, None], (bs1, bs2, num_ec, Q))
    mem = jnp.broadcast_to(memory[None, :, None, :], (bs1, bs2, num_ec, M))
    cat = jnp.concatenate([crit, mem], axis=-1)
    wa = jnp.concatenate([params['wa_q'], params['wa_m']], axis=0)
    logits = (cat @ wa)[..., 0] + params['b_a'][0, 0]
    attn = jax.nn.softmax(logits, axis=2)[..., None]
    wm = jnp.concatenate([params['wm_q'], params['wm_m']], axis=0)
    return (cat * attn) @ wm + params['b_m'][0]


if __name__ == "__main__":
    key = jax.random.PRNGKey(0)
    vocab, word_dim, conv_dim, mem_dim, demo_dim, mlp_dim = 32, 16, 8, 16, 4, 16
    Q = 4 * conv_dim
    bs2, n_visit = 4, 5          # patients, visits
    bs1_inc, n_inc = 2, 8        # trials, inclusion criteria
    bs1_exc, n_exc = 2, 6        # trials, exclusion criteria

    ks = jax.random.split(key, 16)
    ehr = jax.random.normal(ks[0], (bs2, n_visit, vocab), jnp.float32)
    demo = jax.random.normal(ks[1], (bs2, demo_dim), jnp.float32)  # unused by forward
    ehr_mask = (jnp.arange(n_visit)[None, :]
                < jnp.array([5, 3, 4, 2])[:, None]).astype(jnp.float32)
    inc_emb = jax.random.normal(ks[2], (bs1_inc, n_inc, word_dim), jnp.float32)
    inc_mask = (jnp.arange(n_inc)[None, :]
                < jnp.array([8, 5])[:, None]).astype(jnp.float32)
    exc_emb = jax.random.normal(ks[3], (bs1_exc, n_exc, word_dim), jnp.float32)
    exc_mask = (jnp.arange(n_exc)[None, :]
                < jnp.array([6, 4])[:, None]).astype(jnp.float32)

    def init(k, shape, scale=0.1):
        return scale * jax.random.normal(k, shape, jnp.float32)

    params = dict(
        w_emb=init(ks[4], (vocab, word_dim)),                      # ehr_embedding_matrix
        w_ehr_mlp=init(ks[5], (word_dim, mem_dim)),
        b_ehr_mlp=init(ks[6], (1, mem_dim)),
        w_ec=init(ks[7], (word_dim, Q)),                           # ECEmbedding.mlp
        b_ec=init(ks[8], (1, Q)),
        wa_q=init(ks[9], (Q, 1)),                                  # Alignment.alignment (split)
        wa_m=init(ks[10], (mem_dim, 1)),
        b_a=init(ks[11], (1, 1)),
        wm_q=init(ks[12], (Q, mlp_dim)),                           # Alignment.mlp (split)
        wm_m=init(ks[13], (mem_dim, mlp_dim)),
        b_m=init(ks[14], (1, mlp_dim)),
    )
    # TODO(synk): Alignment.word_trans / Alignment.output are declared in __init__
    # but never used in forward, so they are intentionally omitted.

    inputs = {'v': ehr, 'x': demo, 'mask': ehr_mask,
              'inc_emb': inc_emb, 'inc_emb_mask': inc_mask,
              'exc_emb': exc_emb, 'exc_emb_mask': exc_mask}

    # --- ECEmbedding (the spec module): both outputs, checked against torch math ---
    o1_inc, o2_inc = ec_embedding(inc_emb, inc_mask, params['w_ec'], params['b_ec'])
    o1_exc, o2_exc = ec_embedding(exc_emb, exc_mask, params['w_ec'], params['b_ec'])
    jax.block_until_ready(o2_inc)
    r1_inc, r2_inc = reference_ec(inc_emb, inc_mask, params['w_ec'], params['b_ec'])
    r1_exc, r2_exc = reference_ec(exc_emb, exc_mask, params['w_ec'], params['b_ec'])
    assert o1_inc.shape == (bs1_inc, Q) and o2_inc.shape == (bs1_inc, n_inc, Q)
    # 3e-2 tolerances absorb the bf16 MXU operands (f32 accumulation) + approx EUP recip.
    assert jnp.allclose(o1_inc, r1_inc, rtol=3e-2, atol=3e-2)
    assert jnp.allclose(o2_inc, r2_inc, rtol=3e-2, atol=3e-2)
    assert jnp.allclose(o1_exc, r1_exc, rtol=3e-2, atol=3e-2)
    assert jnp.allclose(o2_exc, r2_exc, rtol=3e-2, atol=3e-2)

    # --- full BuildModel forward ---
    out = build_model_forward(inputs, params)
    jax.block_until_ready(out['logit_inc'])
    jax.block_until_ready(out['logit_exc'])

    ref_inc = reference_logits(ehr, ehr_mask, inc_emb, params)
    ref_exc = reference_logits(ehr, ehr_mask, exc_emb, params)
    assert out['logit_inc'].shape == (bs1_inc, bs2, n_inc, mlp_dim)
    assert out['logit_exc'].shape == (bs1_exc, bs2, n_exc, mlp_dim)
    assert jnp.allclose(out['logit_inc'], ref_inc, rtol=3e-2, atol=3e-2)
    assert jnp.allclose(out['logit_exc'], ref_exc, rtol=3e-2, atol=3e-2)
    print("KERNEL_OK")
</pallas_src>

<mosaic_0001>
module attributes {stable_mosaic.version = 11 : i64} {
  func.func @ec_kernel(%arg0: i32, %arg1: i32, %arg2: memref<1x8x16xbf16, #tpu.memory_space<vmem>>, %arg3: memref<1x8x1xbf16, #tpu.memory_space<vmem>>, %arg4: memref<16x32xbf16, #tpu.memory_space<vmem>>, %arg5: memref<1x32xf32, #tpu.memory_space<vmem>>, %arg6: memref<1x1x32xf32, #tpu.memory_space<vmem>>, %arg7: memref<1x8x32xf32, #tpu.memory_space<vmem>>, %arg8: memref<1x16xf32, #tpu.memory_space<vmem>>) attributes {dimension_semantics = [#tpu.dimension_semantics<parallel>, #tpu.dimension_semantics<arbitrary>], iteration_bounds = array<i64: 2, 1>, scalar_prefetch = 0 : i64, scratch_operands = 1 : i64, tpu.core_type = #tpu.core_type<tc>, window_params = [{transform_indices = @transform_0, window_bounds = array<i64: 1, 8, 16>}, {transform_indices = @transform_1, window_bounds = array<i64: 1, 8, 1>}, {pipeline_mode = #tpu.pipeline_mode<synchronous>, transform_indices = @transform_2, window_bounds = array<i64: 16, 32>}, {pipeline_mode = #tpu.pipeline_mode<synchronous>, transform_indices = @transform_3, window_bounds = array<i64: 1, 32>}, {transform_indices = @transform_4, window_bounds = array<i64: 1, 1, 32>}, {transform_indices = @transform_5, window_bounds = array<i64: 1, 8, 32>}]} {
    %c0_i32 = arith.constant 0 : i32
    %0 = arith.cmpi eq, %arg1, %c0_i32 : i32
    %1 = arith.extui %0 : i1 to i32
    %c0_i32_0 = arith.constant 0 : i32
    %2 = arith.cmpi ne, %1, %c0_i32_0 : i32
    scf.if %2 {
      %cst_21 = arith.constant 0.000000e+00 : f32
      %28 = vector.broadcast %cst_21 : f32 to vector<1x16xf32>
      %c0_22 = arith.constant 0 : index
      %c0_23 = arith.constant 0 : index
      %29 = vector.load %arg8[%c0_22, %c0_23] : memref<1x16xf32, #tpu.memory_space<vmem>>, vector<1x16xf32>
      tpu.vector_store %arg8[%c0_22, %c0_23], %28 {strides = array<i32>} : memref<1x16xf32, #tpu.memory_space<vmem>>, vector<1x16xf32>,
    } else {
    }
    %c0 = arith.constant 0 : index
    %c0_1 = arith.constant 0 : index
    %c0_2 = arith.constant 0 : index
    %3 = vector.load %arg2[%c0, %c0_1, %c0_2] : memref<1x8x16xbf16, #tpu.memory_space<vmem>>, vector<1x8x16xbf16>
    %4 = vector.shape_cast %3 : vector<1x8x16xbf16> to vector<8x16xbf16>
    %c0_3 = arith.constant 0 : index
    %c0_4 = arith.constant 0 : index
    %5 = vector.load %arg8[%c0_3, %c0_4] : memref<1x16xf32, #tpu.memory_space<vmem>>, vector<1x16xf32>
    %c0_5 = arith.constant 0 : index
    %c0_6 = arith.constant 0 : index
    %c0_7 = arith.constant 0 : index
    %6 = vector.load %arg3[%c0_5, %c0_6, %c0_7] : memref<1x8x1xbf16, #tpu.memory_space<vmem>>, vector<1x8x1xbf16>
    %7 = vector.shape_cast %6 : vector<1x8x1xbf16> to vector<8x1xbf16>
    %8 = vector.broadcast %7 : vector<8x1xbf16> to vector<8x16xbf16>
    %9 = arith.mulf %4, %8 : vector<8x16xbf16>
    %10 = arith.extf %9 : vector<8x16xbf16> to vector<8x16xf32>
    %cst = arith.constant dense<0.000000e+00> : vector<16xf32>
    %11 = vector.multi_reduction <add>, %10, %cst [0] : vector<8x16xf32> to vector<16xf32>
    %12 = vector.shape_cast %11 : vector<16xf32> to vector<1x16xf32>
    %13 = arith.addf %5, %12 : vector<1x16xf32>
    %c0_8 = arith.constant 0 : index
    %c0_9 = arith.constant 0 : index
    %14 = vector.load %arg8[%c0_8, %c0_9] : memref<1x16xf32, #tpu.memory_space<vmem>>, vector<1x16xf32>
    tpu.vector_store %arg8[%c0_8, %c0_9], %13 {strides = array<i32>} : memref<1x16xf32, #tpu.memory_space<vmem>>, vector<1x16xf32>,
    %c0_10 = arith.constant 0 : index
    %c0_11 = arith.constant 0 : index
    %15 = vector.load %arg4[%c0_10, %c0_11] : memref<16x32xbf16, #tpu.memory_space<vmem>>, vector<16x32xbf16>
    %cst_12 = arith.constant dense<0.000000e+00> : vector<8x32xf32>
    %16 = tpu.matmul %4, %15, %cst_12 {dimension_numbers = #tpu.dot_dimension_numbers<[1], [0], [0], [1], [0, 0, 1, 1], [], []>} : vector<8x16xbf16>, vector<16x32xbf16>, vector<8x32xf32> -> vector<8x32xf32>
    %c0_13 = arith.constant 0 : index
    %c0_14 = arith.constant 0 : index
    %17 = vector.load %arg5[%c0_13, %c0_14] : memref<1x32xf32, #tpu.memory_space<vmem>>, vector<1x32xf32>
    %18 = vector.broadcast %17 : vector<1x32xf32> to vector<8x32xf32>
    %19 = arith.addf %16, %18 : vector<8x32xf32>
    %cst_15 = arith.constant 0.000000e+00 : f32
    %20 = vector.broadcast %cst_15 : f32 to vector<8x32xf32>
    %21 = arith.maximumf %19, %20 : vector<8x32xf32>
    %c0_16 = arith.constant 0 : index
    %c0_17 = arith.constant 0 : index
    %c0_18 = arith.constant 0 : index
    %22 = vector.load %arg7[%c0_16, %c0_17, %c0_18] : memref<1x8x32xf32, #tpu.memory_space<vmem>>, vector<1x8x32xf32>
    %23 = vector.shape_cast %22 : vector<1x8x32xf32> to vector<8x32xf32>
    %24 = vector.shape_cast %21 : vector<8x32xf32> to vector<1x8x32xf32>
    tpu.vector_store %arg7[%c0_16, %c0_17, %c0_18], %24 {strides = array<i32>} : memref<1x8x32xf32, #tpu.memory_space<vmem>>, vector<1x8x32xf32>,
    %c0_i32_19 = arith.constant 0 : i32
    %25 = arith.cmpi eq, %arg1, %c0_i32_19 : i32
    %26 = arith.extui %25 : i1 to i32
    %c0_i32_20 = arith.constant 0 : i32
    %27 = arith.cmpi ne, %26, %c0_i32_20 : i32
    scf.if %27 {
      %c0_21 = arith.constant 0 : index
      %c0_22 = arith.constant 0 : index
      %28 = vector.load %arg8[%c0_21, %c0_22] : memref<1x16xf32, #tpu.memory_space<vmem>>, vector<1x16xf32>
      %29 = arith.truncf %28 : vector<1x16xf32> to vector<1x16xbf16>
      %c0_23 = arith.constant 0 : index
      %c0_24 = arith.constant 0 : index
      %30 = vector.load %arg4[%c0_23, %c0_24] : memref<16x32xbf16, #tpu.memory_space<vmem>>, vector<16x32xbf16>
      %cst_25 = arith.constant dense<0.000000e+00> : vector<1x32xf32>
      %31 = tpu.matmul %29, %30, %cst_25 {dimension_numbers = #tpu.dot_dimension_numbers<[1], [0], [0], [1], [0, 0, 1, 1], [], []>} : vector<1x16xbf16>, vector<16x32xbf16>, vector<1x32xf32> -> vector<1x32xf32>
      %c0_26 = arith.constant 0 : index
      %c0_27 = arith.constant 0 : index
      %32 = vector.load %arg5[%c0_26, %c0_27] : memref<1x32xf32, #tpu.memory_space<vmem>>, vector<1x32xf32>
      %33 = arith.addf %31, %32 : vector<1x32xf32>
      %cst_28 = arith.constant 0.000000e+00 : f32
      %34 = vector.broadcast %cst_28 : f32 to vector<1x32xf32>
      %35 = arith.maximumf %33, %34 : vector<1x32xf32>
      %c0_29 = arith.constant 0 : index
      %c0_30 = arith.constant 0 : index
      %c0_31 = arith.constant 0 : index
      %36 = vector.load %arg6[%c0_29, %c0_30, %c0_31] : memref<1x1x32xf32, #tpu.memory_space<vmem>>, vector<1x1x32xf32>
      %37 = vector.shape_cast %36 : vector<1x1x32xf32> to vector<1x32xf32>
      %38 = vector.shape_cast %35 : vector<1x32xf32> to vector<1x1x32xf32>
      tpu.vector_store %arg6[%c0_29, %c0_30, %c0_31], %38 {strides = array<i32>} : memref<1x1x32xf32, #tpu.memory_space<vmem>>, vector<1x1x32xf32>,
    } else {
    }
    return
  }
  func.func @transform_0(%arg0: i32, %arg1: i32) -> (i32, i32, i32) {
    %c0_i32 = arith.constant 0 : i32
    %c0_i32_0 = arith.constant 0 : i32
    return %arg0, %arg1, %c0_i32 : i32, i32, i32
  }
  func.func @transform_1(%arg0: i32, %arg1: i32) -> (i32, i32, i32) {
    %c0_i32 = arith.constant 0 : i32
    %c0_i32_0 = arith.constant 0 : i32
    return %arg0, %arg1, %c0_i32 : i32, i32, i32
  }
  func.func @transform_2(%arg0: i32, %arg1: i32) -> (i32, i32) {
    %c0_i32 = arith.constant 0 : i32
    %c0_i32_0 = arith.constant 0 : i32
    %c0_i32_1 = arith.constant 0 : i32
    return %c0_i32, %c0_i32_0 : i32, i32
  }
  func.func @transform_3(%arg0: i32, %arg1: i32) -> (i32, i32) {
    %c0_i32 = arith.constant 0 : i32
    %c0_i32_0 = arith.constant 0 : i32
    %c0_i32_1 = arith.constant 0 : i32
    return %c0_i32, %c0_i32_0 : i32, i32
  }
  func.func @transform_4(%arg0: i32, %arg1: i32) -> (i32, i32, i32) {
    %c0_i32 = arith.constant 0 : i32
    %c0_i32_0 = arith.constant 0 : i32
    %c0_i32_1 = arith.constant 0 : i32
    return %arg0, %c0_i32, %c0_i32_0 : i32, i32, i32
  }
  func.func @transform_5(%arg0: i32, %arg1: i32) -> (i32, i32, i32) {
    %c0_i32 = arith.constant 0 : i32
    %c0_i32_0 = arith.constant 0 : i32
    return %arg0, %arg1, %c0_i32 : i32, i32, i32
  }
}

</mosaic_0001>

<bundles_post_ra>
// kernel: tpu_custom_call.1
= control target key start
LH: loop header
LB: loop body
LE: loop exit
PB: predicated region body
PF: predicated region fallthrough
CT: control target
= control target key end

     0   :  { %s1419_s0 = inlined_call_operand.hbm [shape: bf16[2,8,16], index: 0, kind: input, shape index: {}]   ;;  %s1420_s1 = inlined_call_operand.hbm [shape: bf16[2,8,1], index: 1, kind: input, shape index: {}]   ;;  %s1421_s2 = inlined_call_operand.hbm [shape: bf16[16,32], index: 2, kind: input, shape index: {}]   ;;  %s1422_s3 = inlined_call_operand.hbm [shape: f32[1,32], index: 3, kind: input, shape index: {}]   ;;  %s1423_s4 = inlined_call_operand.hbm [shape: f32[2,1,32], index: 4, kind: output, shape index: {0}]   ;;  %s1424_s5 = inlined_call_operand.hbm [shape: f32[2,8,32], index: 5, kind: output, shape index: {1}]  }
   0x1   :  { %1431 = sst [smem:[#allocation22_spill]] %s1421_s2 }
   0x2   :  { %1432 = sst [smem:[#allocation23_spill]] %s1422_s3 }
   0x3   :  { %11 = vsyncpa [#allocation4], 0 }
   0x4   :  { %13 = vsyncpa [#allocation4 + $0x1], 0 }
   0x5   :  { %14 = vsyncpa [#allocation7], 0 }
   0x6   :  { %16 = vsyncpa [#allocation7 + $0x1], 0 }
   0x7   :  { %17 = vsyncpa [#allocation10], 0 }
   0x8   :  { %18 = vsyncpa [#allocation5], 0 }
   0x9   :  { %20 = vsyncpa [#allocation5 + $0x1], 0 }
   0xa   :  { %21 = vsyncpa [#allocation13], 0 }
   0xb   :  { %23 = vsyncpa [#allocation13 + $0x1], 0  ;;  %s1103_s18 = smov 0   ;;  %s1105_s19 = smov 0  }
   0xc   :  { %s1107_s20 = smov 0   ;;  %s1109_s21 = smov 0  }
   0xd   :  { %s1111_s22 = smov 0   ;;  %s1113_s23 = smov 0  }
   0xe LB: > { %1433 = sst [smem:[#allocation20_spill]] %s1055_s22  ;;  %s1134_s24 = sadd.s32 4294967295, %s1059_s23   ;;  %s1059_s23 = sphi %s1113_s23, %s29_s23   ;;  %s1055_s22 = sphi %s1111_s22, %s1454_s22   ;;  %s1051_s21 = sphi %s1109_s21, %s1453_s21   ;;  %s1047_s20 = sphi %s1107_s20, %s1457_s20   ;;  %s1043_s19 = sphi %s1105_s19, %s1456_s19   ;;  %s1039_s18 = sphi %s1103_s18, %s1455_s18  }
   0xf   : > { %s674_s25 = sadd.s32 4294967294, %s1059_s23   ;;  %p63_p0 = scmp.ne.s32.totalorder %s1043_s19, %s1039_s18 }
  0x10   : > { %p1425_p1 = scmp.eq.s32.totalorder %s1134_s24, 0  ;;  %p163_p3 = scmp.eq.s32.totalorder %s674_s25, 1 }
  0x11   : > { %p675_p5 = scmp.ge.s32.totalorder %s1059_s23, 1  ;;  %p198_p7 = scmp.lt.s32.totalorder %s1059_s23, 3 }
  0x12   : > { %p1143_p4 = por %p1425_p1, %p63_p0  ;;  %p1148_p6 = por %p163_p3, %p63_p0 }
  0x13   : > { %p1153_p8 = pnand %p675_p5, %p198_p7  ;;  %s1061_s29 = smov [#allocation8]  }
  0x14   : > { %s1434_s26 = scalar_select %p1143_p4, 1, 0 }
  0x15   : > { %s1435_s27 = scalar_select %p1148_p6, 1, 0 }
  0x16   : > { %s1436_s28 = scalar_select %p1153_p8, 1, 0 }
  0x17   : > { %s210_s30 = sshll.u32 %s1061_s29, 4  ;;  %p731_p9 = pneg %p1153_p8  ;;  %s1157_s30 = int_to_ptr.vmem [resolvable:$true] %s210_s30 }
  0x18   : > { %s1062_s7 = smov [#allocation9]   ;;  %s1438_s2 = sld [smem:[#allocation22_spill]] }
  0x19   : > { %p1164_p11 = pnand %p731_p9, %p1425_p1  ;;  %s224_s8 = sshll.u32 %s1062_s7, 4  ;;  %s1168_s8 = int_to_ptr.vmem [resolvable:$true] %s224_s8 }
  0x1b   : > { %p819_p13 = pneg %p1164_p11 }
  0x1e   : > { %s817_s11 = scalar_lea.hbm %s1438_s2, 128 }
  0x1f   : > { %p818_p12 = scmp.ne.s32.totalorder %s1438_s2, %s817_s11  ;;  %p824_p5 = scmp.lt.u32.totalorder %s817_s11, %s1438_s2 }
  0x21   : > { %p820_p0 = pnand %p819_p13, %p818_p12 }
  0x23   : > { %p821_p3 = pneg %p820_p0 }
  0x25   : > { %p826_p7 = pnand %p824_p5, %p821_p3 }
  0x27   : > { %829 = shalt.err (!%p826_p7)
}
  0x28   : > { %s830_s16 = scalar_lea.vmem %s1157_s30, 128  ;;  %p838_p2 = scmp.lt.s32.totalorder %s1157_s30, %s1157_s30 }
  0x29   : > { %p831_p9 = scmp.ne.s32.totalorder %s1157_s30, %s830_s16  ;;  %p839_p12 = scmp.lt.s32.totalorder %s830_s16, %s830_s16 }
  0x2b   : > { %p833_p10 = pnand %p831_p9, %p819_p13  ;;  %p840_p0 = por %p839_p12, %p838_p2 }
  0x2d   : > { %p834_p1 = pneg %p833_p10 }
  0x2f   : > { %p841_p6 = pnand %p840_p0, %p834_p1 }
  0x31   : > { %844 = shalt.err (!%p841_p6)
}
  0x32   : > { %s1063_s17 = smov 64   ;;  %s1064_s25 = smov 4  }
  0x33   : > { %734 = dma.hbm_to_vmem [thread:$0]  (!%p1164_p11), %s1438_s2, 128, %s1157_s30, [#allocation7], %s1063_s17, %s1063_s17, %s1064_s25  }
  0x34   : > { %s1439_s3 = sld [smem:[#allocation23_spill]] }
  0x3a   : > { %s845_s11 = scalar_lea.hbm %s1439_s3, 16 }
  0x3b   : > { %p846_p2 = scmp.ne.s32.totalorder %s1439_s3, %s845_s11  ;;  %p852_p10 = scmp.lt.u32.totalorder %s845_s11, %s1439_s3 }
  0x3d   : > { %p848_p1 = pnand %p846_p2, %p819_p13 }
  0x3f   : > { %p849_p6 = pneg %p848_p1 }
  0x41   : > { %p854_p3 = pnand %p852_p10, %p849_p6 }
  0x43   : > { %857 = shalt.err (!%p854_p3)
}
  0x44   : > { %s858_s30 = scalar_lea.vmem %s1168_s8, 16  ;;  %s865_s16 = scalar_lea.vmem %s1168_s8, 32 }
  0x45   : > { %p859_p5 = scmp.ne.s32.totalorder %s1168_s8, %s858_s30  ;;  %p866_p12 = scmp.lt.s32.totalorder %s1168_s8, %s1168_s8 }
  0x46   : > { %p867_p0 = scmp.lt.s32.totalorder %s865_s16, %s858_s30 }
  0x47   : > { %p861_p7 = pnand %p859_p5, %p819_p13 }
  0x48   : > { %p868_p2 = por %p867_p0, %p866_p12 }
  0x49   : > { %p862_p9 = pneg %p861_p7 }
  0x4b   : > { %p869_p1 = pnand %p868_p2, %p862_p9 }
  0x4d   : > { %872 = shalt.err (!%p869_p1)
}
  0x4e   : > { %737 = dma.hbm_to_vmem [thread:$0]  (!%p1164_p11), %s1439_s3, 16, %s1168_s8, [#allocation10]  }
  0x4f   : > { %s41_s29 = sadd.s32 1, %s1055_s22  ;;  %s50_s7 = sadd.s32 1, %s1047_s20 }
  0x50   : > { %p43_p13 = scmp.ge.s32.totalorder %s41_s29, 2  ;;  %p57_p6 = scmp.ne.s32.totalorder %s1047_s20, %s1043_s19 }
  0x51   : > { %p58_p10 = scmp.eq.s32.totalorder %s1059_s23, 0  ;;  %p754_p3 = scmp.lt.s32.totalorder %s1059_s23, 2 }
  0x52   : > { %s1459_s29 = smov (%p43_p13, %s41_s29), 0  ;;  %p1441_p7 = scmp.eq.s32.totalorder %s1134_s24, 1 }
  0x53   : > { %1440 = sst [smem:[#allocation21_spill]] %s1459_s29  ;;  %p59_p5 = por %p58_p10, %p57_p6 }
  0x54   : > { %p1233_p9 = por %p1441_p7, %p57_p6  ;;  %s45_s9 = ssub.s32 %s1055_s22, %s1459_s29 }
  0x55   : > { %s235_s10 = sand.u32 1, %s1047_s20   ;;  %p48_p12 = scmp.eq.s32.totalorder %s45_s9, 0 }
  0x56   : > { %s1442_s6 = scalar_select %p1233_p9, 1, 0 }
  0x57   : > { %s1240_s8 = sshll.u32 %s235_s10, 2  ;;  %s680_s11 = sshll.u32 %s1055_s22, 6 }
  0x58   : > { %s1244_s12 = scalar_select %p48_p12, %s1047_s20, %s50_s7  }
  0x59   : > { %s1249_s15 = scalar_lea.hbm %s1419_s0, %s680_s11  ;;  %s239_s30 = scalar_lea.vmem [#allocation3], %s1240_s8 }
  0x5a   : > { %s247_s16 = sshll.u32 %s239_s30, 4  ;;  %p1254_p11 = pnand %p754_p3, %p59_p5  ;;  %s1258_s16 = int_to_ptr.vmem [resolvable:$true] %s247_s16 }
  0x5b   : > { %s1263_s9 = scalar_lea.hbm %s1420_s1, %s680_s11  ;;  %s236_s13 = scalar_lea.sflag [#allocation4], %s235_s10 }
  0x5c   : > { %s873_s14 = scalar_lea.hbm %s1249_s15, 64  ;;  %p875_p2 = pneg %p1254_p11 }
  0x5d   : > { %p874_p0 = scmp.ne.s32.totalorder %s1249_s15, %s873_s14  ;;  %s878_s3 = scalar_lea.hbm %s1419_s0, 128 }
  0x5e   : > { %p879_p6 = scmp.lt.u32.totalorder %s1249_s15, %s1419_s0  ;;  %p880_p10 = scmp.lt.u32.totalorder %s878_s3, %s873_s14 }
  0x5f   : > { %p876_p1 = pnand %p875_p2, %p874_p0  ;;  %p882_p5 = scmp.lt.u32.totalorder %s873_s14, %s1249_s15 }
  0x60   : > { %p881_p3 = por %p880_p10, %p879_p6 }
  0x61   : > { %p877_p13 = pneg %p876_p1 }
  0x62   : > { %p883_p7 = por %p882_p5, %p881_p3 }
  0x64   : > { %p884_p12 = pnand %p883_p7, %p877_p13 }
  0x66   : > { %887 = shalt.err (!%p884_p12)
}
  0x67   : > { %s888_s10 = scalar_lea.vmem %s1258_s16, 64  ;;  %s1065_s2 = smov [#allocation3]  }
  0x68   : > { %p889_p0 = scmp.ne.s32.totalorder %s1258_s16, %s888_s10  ;;  %s893_s11 = sshll.u32 %s1065_s2, 4  ;;  %s894_s11 = int_to_ptr.vmem [resolvable:$false] %s893_s11 }
  0x69   : > { %s895_s22 = scalar_lea.vmem %s894_s11, 128  ;;  %p896_p4 = scmp.lt.s32.totalorder %s1258_s16, %s894_s11 }
  0x6a   : > { %p891_p1 = pnand %p889_p0, %p875_p2  ;;  %p897_p6 = scmp.lt.s32.totalorder %s895_s22, %s888_s10 }
  0x6c   : > { %p892_p9 = pneg %p891_p1  ;;  %p898_p10 = por %p897_p6, %p896_p4 }
  0x6e   : > { %p899_p3 = pnand %p898_p10, %p892_p9 }
  0x70   : > { %902 = shalt.err (!%p899_p3)
}
  0x71   : > { %741 = dma.hbm_to_vmem [thread:$0]  (!%p1254_p11), %s1249_s15, 64, %s1258_s16, %s236_s13  }
  0x72   : > { %s254_s3 = sand.u32 1, %s1059_s23   ;;  %s258_s29 = scalar_lea.vmem [#allocation6], %s1240_s8 }
  0x73   : > { %s266_s25 = sshll.u32 %s258_s29, 4  ;;  %s255_s7 = scalar_lea.sflag [#allocation7], %s254_s3  ;;  %s267_s25 = int_to_ptr.vmem [resolvable:$true] %s266_s25 }
  0x74   : > { %s903_s14 = scalar_lea.hbm %s1263_s9, 64  ;;  %s908_s2 = scalar_lea.hbm %s1420_s1, 128 }
  0x75   : > { %p904_p4 = scmp.ne.s32.totalorder %s1263_s9, %s903_s14  ;;  %p909_p5 = scmp.lt.u32.totalorder %s1263_s9, %s1420_s1 }
  0x76   : > { %p910_p7 = scmp.lt.u32.totalorder %s908_s2, %s903_s14  ;;  %p912_p0 = scmp.lt.u32.totalorder %s903_s14, %s1263_s9 }
  0x77   : > { %p906_p9 = pnand %p904_p4, %p875_p2 }
  0x78   : > { %p911_p12 = por %p910_p7, %p909_p5 }
  0x79   : > { %p907_p13 = pneg %p906_p9 }
  0x7a   : > { %p913_p1 = por %p912_p0, %p911_p12 }
  0x7c   : > { %p914_p6 = pnand %p913_p1, %p907_p13 }
  0x7e   : > { %917 = shalt.err (!%p914_p6)
}
  0x7f   : > { %s918_s8 = scalar_lea.vmem %s267_s25, 64  ;;  %s1066_s15 = smov [#allocation6]  }
  0x80   : > { %p919_p10 = scmp.ne.s32.totalorder %s267_s25, %s918_s8  ;;  %s923_s16 = sshll.u32 %s1066_s15, 4  ;;  %s924_s16 = int_to_ptr.vmem [resolvable:$false] %s923_s16 }
  0x81   : > { %s925_s13 = scalar_lea.vmem %s924_s16, 128  ;;  %p926_p9 = scmp.lt.s32.totalorder %s267_s25, %s924_s16 }
  0x82   : > { %p921_p3 = pnand %p919_p10, %p875_p2  ;;  %p927_p8 = scmp.lt.s32.totalorder %s925_s13, %s918_s8 }
  0x84   : > { %p922_p4 = pneg %p921_p3  ;;  %p928_p5 = por %p927_p8, %p926_p9 }
  0x86   : > { %p929_p7 = pnand %p928_p5, %p922_p4 }
  0x88   : > { %932 = shalt.err (!%p929_p7)
}
  0x89   : > { %744 = dma.hbm_to_vmem [thread:$0]  (!%p1254_p11), %s1263_s9, 64, %s267_s25, %s255_s7  }
  0x8a   : > { %p1444_p13 = scmp.ne.s32.totalorder %s1436_s28, 0 }
  0x8b   : > { %s1314_s3 = sand.u32 (!%p1444_p13), 1, %s1043_s19   ;;  %p1445_p2 = scmp.ne.s32.totalorder (!%p1444_p13), %s1434_s26, 0 }
  0x8c   : > { %275 = sbr.rel (%p1444_p13) target bundleno = 548 (0x224), region = 36  ;;  %s684_s29 = sshll.u32 (!%p1444_p13), %s1314_s3, 2 }
  0x8d   : > { %s278_s14 = scalar_lea.sflag (!%p1444_p13), [#allocation4], %s1314_s3  ;;  %s281_s30 = scalar_lea.vmem (!%p1444_p13), [#allocation3], %s684_s29 }
  0x93   : > { %1014 = dma.done.wait (%p1445_p2), %s278_s14, 64  }
  0x94   : > { %1016 = vsyncadd (%p1445_p2), %s278_s14, 4294967232  ;;  %s286_s17 = sand.u32 1, %s1134_s24   ;;  %s290_s28 = scalar_lea.vmem [#allocation6], %s684_s29 }
  0x95   : > { %s287_s9 = scalar_lea.sflag [#allocation7], %s286_s17 }
  0x96   : > { %1018 = dma.done.wait (%p1445_p2), %s287_s9, 64  }
  0x97   : > { %1020 = vsyncadd (%p1445_p2), %s287_s9, 4294967232  ;;  %p1446_p8 = scmp.eq.s32.totalorder %s1134_s24, 0 }
  0x99   : > { %1022 = dma.done.wait (%p1446_p8), [#allocation7], 128   ;;  %p1447_p11 = pmov %p1446_p8 }
  0x9a   : > { %p1448_p12 = pmov %p1446_p8 }
  0x9b   : > { %1024 = vsyncadd (%p1447_p11), [#allocation7], 4294967168 }
  0x9c   : > { %1026 = dma.done.wait (%p1448_p12), [#allocation10], 16   ;;  %p1449_p0 = pmov %p1446_p8 }
  0x9d   : > { %v1067_v0 = vmov 0   ;;  %v343_v1 = vld [vmem:[%s290_s28] sm:$0xf]  ;;  %vm339_vm0 = vcmask 122880   ;;  %v815_v2 = vld [vmem:[#allocation8] sm:$0xff]   ;;  %v1068_v3 = vmov 0.0   ;;  %v352_v8 = vlaneseq }
  0x9e   : > { %1028 = vsyncadd (%p1449_p0), [#allocation10], 4294967280  ;;  %814 = vset.pattern.permute.xlu0 %v1067_v0  ;;  %340 = vst.msk [vmem:[#allocation2] sm:$0x1] %vm339_vm0, %v1068_v3  ;;  %703 = vmatprep.subr.bf16.mxu0 %v1068_v3  ;;  %vm1069_vm1 = vmmov 0   ;;  %vm358_vm2 = vcmask 130048  }
  0x9f   : > { %346 = vperm.xlu0 %814, %v343_v1   ;;  %705 = vmatprep.mubr.msk.bf16.mxu0 %vm1069_vm1, %v1068_v3  ;;  %v341_v4 = vld [vmem:[%s281_s30] sm:$0xf]  ;;  %v816_v5 = vld [vmem:[#allocation8] sm:$0xff]   ;;  %v1070_v6 = vmov 839922192   ;;  %v353_v10 = vshrl.u32 %v352_v8, 7 }
  0xa0   : > { %704 = vmatpush3.bf16.msra.mxu0 %v815_v2  ;;  %709 = vmatprep.subr.bf16.mxu1 %v1068_v3  ;;  %v350_v7 = vunpack.c.l.s4 %v1070_v6  ;;  %v689_v31 = vld [vmem:[#allocation9] ss:$0 sm:$0xff]  ;;  %s688_s24 = sshll.u32 %s1314_s3, 3  ;;  %vm428_vm3 = vcmask 261120   ;;  %s696_s25 = sshll.u32 %s1051_s21, 7 }
  0xa1   : > { %711 = vmatprep.mubr.msk.bf16.mxu1 %vm1069_vm1, %v1068_v3  ;;  %710 = vmatpush3.bf16.msra.mxu1 %v816_v5  ;;  %s333_s26 = scalar_lea.vmem [#allocation12], %s688_s24  ;;  %s1345_s11 = scalar_lea.hbm %s1424_s5, %s696_s25 }
  0xa2   : > { %v351_v9 = vunpack.c.0.s8 %v350_v7  ;;  %s522_s7 = sshll.u32 %s333_s26, 4  ;;  %s495_s22 = scalar_lea.sflag [#allocation13], %s1314_s3  ;;  %s523_s7 = int_to_ptr.vmem [resolvable:$true] %s522_s7 }
  0xa3   : > { %706 = vmatmul.mubr.msk.bf16.vlgmr.msra.gmra.mrb[0].mxu0 %vm358_vm2, %v341_v4  ;;  %s933_s8 = scalar_lea.vmem %s523_s7, 128  ;;  %p1450_p6 = scmp.ne.s32.totalorder %s1442_s6, 0 }
  0xa4   : > { %v354_v11 = vsub.s32 %v351_v9, %v353_v10  ;;  %p934_p1 = scmp.ne.s32.totalorder %s523_s7, %s933_s8  ;;  %s1071_s15 = smov [#allocation12]  }
  0xa5   : > { %v342_v22 = vld [vmem:[#allocation2] sm:$0x1]  ;;  %s937_s16 = sshll.u32 %s1071_s15, 4  ;;  %s938_s16 = int_to_ptr.vmem [resolvable:$false] %s937_s16 }
  0xa6   : > { %p935_p10 = pnand %p934_p1, %p1450_p6  ;;  %s939_s13 = scalar_lea.vmem %s938_s16, 256 }
  0xa7   : > { %p940_p4 = scmp.lt.s32.totalorder %s523_s7, %s938_s16  ;;  %p941_p9 = scmp.lt.s32.totalorder %s939_s13, %s933_s8 }
  0xa8   : > { %p936_p3 = pneg %p935_p10 }
  0xa9   : > { %p942_p5 = por %p941_p9, %p940_p4 }
  0xab   : > { %p943_p7 = pnand %p942_p5, %p936_p3 }
 0x11e   : > { %v347_v12 = vpop.permute.xlu0 %346 }
 0x11f   : > { %v355_v13 = vrot.slane %v347_v12, %v354_v11 }
 0x121   : > { %v356_v14 = vmul.bf16 %v355_v13, %v341_v4 }
 0x123   : > { %v357_v15 = vunpack.c.l.bf16 %v356_v14 }
 0x125   : > { %v359_v16 = vsel %vm358_vm2, %v357_v15, 0.0 }
 0x126   : > { %v360_v17 = vrot.slane %v359_v16, 4 }
 0x128   : > { %v361_v18 = vadd.f32 %v360_v17, %v359_v16 }
 0x12a   : > { %v362_v19 = vrot.slane %v361_v18, 2 }
 0x12c   : > { %v363_v20 = vadd.f32 %v362_v19, %v361_v18 }
 0x12e   : > { %v364_v21 = vrot.slane %v363_v20, 1 }
 0x130   : > { %v365_v23 = vadd.f32 %v364_v21, %v363_v20 }
 0x132   : > { %v366_v24 = vadd.f32 %v365_v23, %v342_v22 }
 0x134   : > { %368 = vst.msk [vmem:[#allocation2] sm:$0x1] %vm339_vm0, %v366_v24 }
 0x13b   : > { %v433_v25 = vld [vmem:[#allocation2] sm:$0x1] }
 0x13c   : > { %v434_v26 = vpack.c.bf16 %v433_v25, %v433_v25 }
 0x13e   : > { %712 = vmatmul.mubr.msk.bf16.vlgmr.msra.gmra.mrb[0].mxu1 %vm358_vm2, %v434_v26 }
 0x176   : > { %v421_v27 = vpop.f32.mrb[0].mxu0 }
 0x177   : > { %v707_v28 = vpop.f32.mrb[1].mxu0  ;;  %v422_v32 = vadd.f32 %v689_v31, %v421_v27 }
 0x178   : > { %v424_v29 = vpop.f32.mrb[2].mxu0 }
 0x179   : > { %v708_v30 = vpop.f32.mrb[3].mxu0  ;;  %v427_v33 = vmax.f32 %v422_v32, 0.0 }
 0x17b   : > { %429 = vst.msk [vmem:[%s333_s26] sm:$0xff] %vm428_vm3, %v427_v33 }
 0x17c   : > { %946 = shalt.err (!%p943_p7)
}
 0x17d   : > { %s947_s29 = scalar_lea.hbm %s1345_s11, 128  ;;  %s951_s17 = scalar_lea.hbm %s1424_s5, 256 }
 0x17e   : > { %p948_p13 = scmp.ne.s32.totalorder %s1345_s11, %s947_s29  ;;  %p952_p11 = scmp.lt.u32.totalorder %s1345_s11, %s1424_s5 }
 0x17f   : > { %p953_p12 = scmp.lt.u32.totalorder %s951_s17, %s947_s29  ;;  %p955_p1 = scmp.lt.u32.totalorder %s947_s29, %s1345_s11 }
 0x180   : > { %p949_p2 = pnand %p948_p13, %p1450_p6 }
 0x181   : > { %p954_p0 = por %p953_p12, %p952_p11 }
 0x182   : > { %p950_p8 = pneg %p949_p2 }
 0x183   : > { %p956_p10 = por %p955_p1, %p954_p0 }
 0x185   : > { %p957_p3 = pnand %p956_p10, %p950_p8 }
 0x187   : > { %960 = shalt.err (!%p957_p3)
}
 0x188   : > { %728 = dma.vmem_to_hbm [thread:$0]  (%p1450_p6), %s523_s7, 128, %s1345_s11, %s495_s22   ;;  %v437_v34 = vld [vmem:[#allocation9] sm:$0x1]  ;;  %vm488_vm4 = vcmask 253952  }
 0x189   : > { %s695_s24 = sshll.u32 %s1051_s21, 4  ;;  %s326_s26 = scalar_lea.vmem [#allocation11], %s1314_s3 }
 0x18a   : > { %s508_s25 = sshll.u32 %s326_s26, 4  ;;  %s1370_s8 = scalar_lea.hbm %s1423_s4, %s695_s24  ;;  %s1372_s25 = int_to_ptr.vmem [resolvable:$true] %s508_s25 }
 0x18b   : > { %s491_s21 = scalar_lea.sflag [#allocation5], %s1314_s3  ;;  %s961_s7 = scalar_lea.vmem %s1372_s25, 16 }
 0x18c   : > { %p962_p4 = scmp.ne.s32.totalorder %s1372_s25, %s961_s7  ;;  %s1072_s11 = smov [#allocation11]  }
 0x18d   : > { %s965_s22 = sshll.u32 %s1072_s11, 4  ;;  %s966_s22 = int_to_ptr.vmem [resolvable:$false] %s965_s22 }
 0x18e   : > { %p963_p9 = pnand %p962_p4, %p1450_p6  ;;  %s967_s15 = scalar_lea.vmem %s966_s22, 32 }
 0x18f   : > { %p968_p7 = scmp.lt.s32.totalorder %s1372_s25, %s966_s22  ;;  %p969_p13 = scmp.lt.s32.totalorder %s967_s15, %s961_s7 }
 0x190   : > { %p964_p5 = pneg %p963_p9 }
 0x191   : > { %p970_p2 = por %p969_p13, %p968_p7 }
 0x193   : > { %p971_p8 = pnand %p970_p2, %p964_p5 }
 0x211   : > { %v481_v35 = vpop.f32.mrb[0].mxu1 }
 0x212   : > { %v482_v36 = vadd.f32 %v481_v35, %v437_v34  ;;  %v713_v37 = vpop.f32.mrb[1].mxu1 }
 0x213   : > { %v484_v38 = vpop.f32.mrb[2].mxu1 }
 0x214   : > { %v487_v39 = vmax.f32 %v482_v36, 0.0  ;;  %v714_v40 = vpop.f32.mrb[3].mxu1 }
 0x216   : > { %489 = vst.msk [vmem:[%s326_s26] sm:$0x1] %vm488_vm4, %v487_v39 }
 0x217   : > { %974 = shalt.err (!%p971_p8)
}
 0x218   : > { %s975_s3 = scalar_lea.hbm %s1370_s8, 16  ;;  %s979_s29 = scalar_lea.hbm %s1423_s4, 32 }
 0x219   : > { %p976_p11 = scmp.ne.s32.totalorder %s1370_s8, %s975_s3  ;;  %p980_p1 = scmp.lt.u32.totalorder %s1370_s8, %s1423_s4 }
 0x21a   : > { %p981_p10 = scmp.lt.u32.totalorder %s979_s29, %s975_s3  ;;  %p983_p4 = scmp.lt.u32.totalorder %s975_s3, %s1370_s8 }
 0x21b   : > { %p977_p12 = pnand %p976_p11, %p1450_p6 }
 0x21c   : > { %p982_p3 = por %p981_p10, %p980_p1 }
 0x21d   : > { %p978_p0 = pneg %p977_p12 }
 0x21e   : > { %p984_p9 = por %p983_p4, %p982_p3 }
 0x220   : > { %p985_p5 = pnand %p984_p9, %p978_p0 }
 0x222   : > { %988 = shalt.err (!%p985_p5)
}
 0x223   : > { %727 = dma.vmem_to_hbm [thread:$0]  (%p1450_p6), %s1372_s25, 16, %s1370_s8, %s491_s21  }
 0x224 PF: > { %s534_s17 = sand.u32 1, %s1039_s18   ;;  %p1451_p7 = scmp.ne.s32.totalorder %s1435_s27, 0 }
 0x225   : > { %p1452_p13 = scmp.ge.s32.totalorder %s1059_s23, 2  ;;  %s535_s9 = scalar_lea.sflag [#allocation5], %s534_s17 }
 0x227   : > { %p746_p2 = pnand %p1452_p13, %p1451_p7 }
 0x229   : > { %1030 = dma.done.wait (!%p746_p2), %s535_s9, 16  }
 0x22a   : > { %1032 = vsyncadd (!%p746_p2), %s535_s9, 4294967280  ;;  %s543_s28 = scalar_lea.sflag [#allocation13], %s534_s17 }
 0x22b   : > { %1034 = dma.done.wait (!%p746_p2), %s543_s28, 128  }
 0x22c   : > { %1036 = vsyncadd (!%p746_p2), %s543_s28, 4294967168  ;;  %s29_s23 = sadd.s32 1, %s1059_s23   ;;  %s1453_s21 = sld [smem:[#allocation20_spill]] }
 0x22d   : > { %p26_p8 = scmp.ge.s32.totalorder %s29_s23, 4   ;;  %s1454_s22 = sld [smem:[#allocation21_spill]] }
 0x22e   : > { %s1455_s18 = smov %s1043_s19  ;;  %s1456_s19 = smov %s1047_s20 }
 0x22f   : > { %s1457_s20 = smov %s1244_s12  ;;  %28 = sbr.rel (!%p26_p8) target bundleno = 14 (0xe), region = 127 }
 0x236   :  { %548 = vsyncpa [#allocation4], 1 }
 0x237   :  { %550 = vsyncpa [#allocation4 + $0x1], 1 }
 0x238   :  { %551 = vsyncpa [#allocation7], 1 }
 0x239   :  { %553 = vsyncpa [#allocation7 + $0x1], 1 }
 0x23a   :  { %554 = vsyncpa [#allocation10], 1 }
 0x23b   :  { %555 = vsyncpa [#allocation5], 1 }
 0x23c   :  { %557 = vsyncpa [#allocation5 + $0x1], 1 }
 0x23d   :  { %558 = vsyncpa [#allocation13], 1 }
 0x23e   :  { %560 = vsyncpa [#allocation13 + $0x1], 1 }

</bundles_post_ra>
